<compile_context>
chip_gen: v7x
topology: tpu7x:2x2x1
jax: 0.10.0
libtpu: 0.0.40
codegen_flags: <defaults>
</compile_context>

<pallas_src>
import functools

import numpy as np
import jax
import jax.numpy as jnp
from jax import lax
from jax.experimental import pallas as pl
from jax.experimental.pallas import tpu as pltpu


def _round_up(x, m):
    return ((x + m - 1) // m) * m


# ----------------------------------------------------------------------------
# WaveNet `dilate` (pad + permute + view + permute), faithful to the PyTorch
# reference.  Pure reindexing; stays in XLA.
# ----------------------------------------------------------------------------
def dilate(x, dilation, init_dilation=1, pad_start=True):
    n, c, l = x.shape
    if dilation == init_dilation:
        return x
    df = dilation / init_dilation
    new_l = int(np.ceil(l / df) * df)
    if new_l != l:
        pad = new_l - l
        cfg = ((0, 0), (0, 0), (pad, 0)) if pad_start else ((0, 0), (0, 0), (0, pad))
        x = jnp.pad(x, cfg)
        l = new_l
    l_new = int(round(l / df))
    n_new = int(round(n * df))
    # permute(1,2,0) -> (c, l, n), contiguous view(c, l_new, n_new), permute(2,0,1)
    x = jnp.transpose(x, (1, 2, 0)).reshape(c, l_new, n_new)
    return jnp.transpose(x, (2, 0, 1))


# ----------------------------------------------------------------------------
# Fused WaveNetLayer kernel.
#   x_ref    : (C_p, T)       merged (C, batch*time) dilated input tile, bf16
#   halo_ref : (C_p, 128)     first 128 columns of the NEXT tile (cross-tile taps)
#   w1_ref   : (K*C_p, C_p)   dilated-conv weights, rows [k*C_p:(k+1)*C_p] = tap k
#   w2_ref   : (C_p, C_p)     1x1-conv weights
#   o_ref    : (C_p, T)       output tile, bf16
# ----------------------------------------------------------------------------
def _wavenet_layer_kernel(x_ref, halo_ref, w1_ref, w2_ref, o_ref, *, k_taps, c_p):
    cur = jnp.maximum(x_ref[...], 0)        # ReLU(dilated input), bf16
    halo = jnp.maximum(halo_ref[...], 0)    # ReLU of the next tile's leading lanes

    # Tap 0: unshifted.
    acc = jnp.dot(w1_ref[0:c_p, :], cur, preferred_element_type=jnp.float32)
    # Taps 1..K-1: shift the ReLU'd input left by k lanes, wrapping the last k
    # lanes in from the halo block (tap traffic stays 1x; MXU has huge slack).
    for k in range(1, k_taps):
        shifted = jnp.concatenate([cur[:, k:], halo[:, :k]], axis=-1)
        acc = acc + jnp.dot(w1_ref[k * c_p:(k + 1) * c_p, :], shifted,
                            preferred_element_type=jnp.float32)

    acc = jnp.maximum(acc, 0.0)             # second ReLU, on the f32 accumulator
    y = jnp.dot(w2_ref[...], acc.astype(w2_ref.dtype),
                preferred_element_type=jnp.float32)
    o_ref[...] = y.astype(o_ref.dtype)


def wavenet_layer_pallas(x, w_dil, w_1x1, *, dilation, init_dilation,
                         residual=True, compute_dtype=jnp.bfloat16,
                         n_tile_max=2048):
    """x: (N, Cin, L) f32; w_dil: (Cout, Cin, K); w_1x1: (Cout, Cout, 1)."""
    cout, cin, K = w_dil.shape

    xd = dilate(x, dilation, init_dilation)             # (B, Cin, L), f32
    B, _, L = xd.shape
    if L < K:
        # TODO(synk): PyTorch pads via ConstantPad1d(kernel_size - l) here, which
        # trips its own assert at these sizes; path is unreachable, not replicated.
        raise NotImplementedError("l < kernel_size path not exercised")
    Lout = L - K + 1

    if residual and cin != cout:
        # TODO(synk): expand_as broadcast residual (in_channels == 1) not implemented.
        raise NotImplementedError("residual requires in_channels == out_channels")

    # ---- channels padded to a multiple of 16 (bf16 sublane tile).
    C_p = _round_up(max(cin, cout), 16)

    # ---- merged batch*time lane axis: column b*L + t holds xd[b, :, t].
    # A shift of +k on this axis is exactly tap k (valid outputs never cross a
    # batch boundary because t + K - 1 <= L - 1).
    N = B * L
    N_tile = max(128, (min(n_tile_max, _round_up(N, 128)) // 128) * 128)
    n_tiles = -(-N // N_tile)
    if n_tiles > 1 and n_tiles % 2 == 1:
        n_tiles += 1                       # even grid -> balanced over v7x's 2 TCs
    N_pad = n_tiles * N_tile
    W_total = N_pad + 128                  # +128: last tile's halo read stays in-bounds

    # ---- activation slab: cast to bf16 FIRST, then pad channels / transpose / pad lanes.
    xd_c = xd.astype(compute_dtype)
    xd_c = jnp.pad(xd_c, ((0, 0), (0, C_p - cin), (0, 0)))
    x_m = jnp.transpose(xd_c, (1, 0, 2)).reshape(C_p, N)
    x_m = jnp.pad(x_m, ((0, 0), (0, W_total - N)))

    # ---- weight relayout: taps stacked along sublanes (rows k*C_p:(k+1)*C_p = tap k).
    w1_p = jnp.zeros((C_p, C_p, K), w_dil.dtype).at[:cout, :cin, :].set(w_dil)
    w1_stack = jnp.transpose(w1_p, (2, 0, 1)).reshape(K * C_p, C_p).astype(compute_dtype)
    w2_p = (jnp.zeros((C_p, C_p), w_1x1.dtype)
            .at[:cout, :cout].set(w_1x1[:, :, 0]).astype(compute_dtype))

    blocks_per_tile = N_tile // 128
    kernel = functools.partial(_wavenet_layer_kernel, k_taps=K, c_p=C_p)

    out = pl.pallas_call(
        kernel,
        out_shape=jax.ShapeDtypeStruct((C_p, N_pad), compute_dtype),
        grid_spec=pltpu.PrefetchScalarGridSpec(
            num_scalar_prefetch=0,
            grid=(n_tiles,),
            in_specs=[
                # main activation tile
                pl.BlockSpec((C_p, N_tile), lambda i: (0, i)),
                # 128-lane halo: leading columns of the NEXT tile (same array)
                pl.BlockSpec((C_p, 128),
                             lambda i: (0, (i + 1) * blocks_per_tile)),
                # weights: VMEM-resident across the grid
                pl.BlockSpec((K * C_p, C_p), lambda i: (0, 0)),
                pl.BlockSpec((C_p, C_p), lambda i: (0, 0)),
            ],
            out_specs=pl.BlockSpec((C_p, N_tile), lambda i: (0, i)),
        ),
        compiler_params=pltpu.CompilerParams(
            dimension_semantics=("parallel",),      # independent tiles: 2 TCs on v7x
            vmem_limit_bytes=48 * 1024 * 1024,      # < v7x's 64 MiB physical VMEM
        ),
    )(x_m, x_m, w1_stack, w2_p)

    # ---- unpack: drop channel / lane padding; per-batch lane stride is L.
    out = out[:cout, :N].reshape(cout, B, L)[:, :, :Lout]
    out = jnp.transpose(out, (1, 0, 2))             # (B, Cout, Lout), bf16
    if residual:
        # Exact f32 residual (pre-ReLU dilated input), fused into this epilogue.
        out = out.astype(jnp.float32) + xd[:, :, K - 1:]
    return out.astype(x.dtype)


# ----------------------------------------------------------------------------
# Module equivalent of WaveNetLayer (forward pass only).
# ----------------------------------------------------------------------------
class WaveNetLayerPallas:
    def __init__(self, in_channels, out_channels, kernel_size=2, dilation=2,
                 init_dilation=1, residual_connection=True, key=None):
        self.in_channels = in_channels
        self.out_channels = out_channels
        self.kernel_size = kernel_size
        self.dilation = dilation
        self.init_dilation = init_dilation
        self.residual = residual_connection
        k1, k2 = jax.random.split(key)
        b1 = 1.0 / np.sqrt(in_channels * kernel_size)
        b2 = 1.0 / np.sqrt(out_channels * 1)
        # nn.Conv1d default init: U(+/- 1/sqrt(fan_in)), bias=False
        self.w_dil = jax.random.uniform(k1, (out_channels, in_channels, kernel_size),
                                        dtype=jnp.float32, minval=-b1, maxval=b1)
        self.w_1x1 = jax.random.uniform(k2, (out_channels, out_channels, 1),
                                        dtype=jnp.float32, minval=-b2, maxval=b2)
        # TODO(synk): DilatedQueue / generate() incremental sampling path (stateful
        # Python-side queue) is not translated; only forward() is implemented.

    def __call__(self, x):
        return wavenet_layer_pallas(
            x, self.w_dil, self.w_1x1,
            dilation=self.dilation, init_dilation=self.init_dilation,
            residual=self.residual)


# ----------------------------------------------------------------------------
# Pure-JAX f32 reference of the same forward (validation only).
# ----------------------------------------------------------------------------
def _reference_forward(x, w_dil, w_1x1, *, dilation, init_dilation, residual):
    K = w_dil.shape[2]
    xd = dilate(x, dilation, init_dilation)
    r = jax.nn.relu(xd)
    r = lax.conv_general_dilated(r, w_dil, window_strides=(1,), padding="VALID",
                                 dimension_numbers=("NCH", "OIH", "NCH"))
    r = jax.nn.relu(r)
    r = lax.conv_general_dilated(r, w_1x1, window_strides=(1,), padding="VALID",
                                 dimension_numbers=("NCH", "OIH", "NCH"))
    if residual:
        r = r + xd[:, :, K - 1:]
    return r


if __name__ == "__main__":
    key = jax.random.PRNGKey(0)
    kx1, kw, kx2, kw1, kw2 = jax.random.split(key, 5)

    # ---- Test 1: module-sized case (matches the PyTorch defaults) -------------
    in_channels = out_channels = 4
    kernel_size, dilation, init_dilation = 2, 2, 1
    x = jax.random.normal(kx1, (init_dilation, in_channels, 16), dtype=jnp.float32)

    layer = WaveNetLayerPallas(in_channels, out_channels, kernel_size=kernel_size,
                               dilation=dilation, init_dilation=init_dilation,
                               residual_connection=True, key=kw)
    out = layer(x)                      # (2, 4, 7)
    jax.block_until_ready(out)

    ref = _reference_forward(x, layer.w_dil, layer.w_1x1, dilation=dilation,
                             init_dilation=init_dilation, residual=True)
    # bf16 compute inside the kernel -> relaxed tolerance vs. f32 reference.
    np.testing.assert_allclose(np.asarray(out), np.asarray(ref), rtol=5e-2, atol=5e-2)

    # ---- Test 2: multi-tile grid, exercises the cross-tile halo tap path ------
    cio, ks2, dil2 = 8, 2, 2
    x2 = jax.random.normal(kx2, (1, cio, 520), dtype=jnp.float32)
    b1 = 1.0 / np.sqrt(cio * ks2)
    w_dil2 = jax.random.uniform(kw1, (cio, cio, ks2), dtype=jnp.float32,
                                minval=-b1, maxval=b1)
    b2 = 1.0 / np.sqrt(cio)
    w_1x12 = jax.random.uniform(kw2, (cio, cio, 1), dtype=jnp.float32,
                                minval=-b2, maxval=b2)
    out2 = wavenet_layer_pallas(x2, w_dil2, w_1x12, dilation=dil2, init_dilation=1,
                                residual=True, n_tile_max=128)  # force several tiles
    jax.block_until_ready(out2)
    ref2 = _reference_forward(x2, w_dil2, w_1x12, dilation=dil2, init_dilation=1,
                              residual=True)
    np.testing.assert_allclose(np.asarray(out2), np.asarray(ref2),
                               rtol=5e-2, atol=5e-2)

    print("KERNEL_OK")
</pallas_src>

<mosaic_0001>
module attributes {stable_mosaic.version = 11 : i64} {
  func.func @_wavenet_layer_kernel(%arg0: i32, %arg1: memref<16x128xbf16, #tpu.memory_space<vmem>>, %arg2: memref<16x128xbf16, #tpu.memory_space<vmem>>, %arg3: memref<32x16xbf16, #tpu.memory_space<vmem>>, %arg4: memref<16x16xbf16, #tpu.memory_space<vmem>>, %arg5: memref<16x128xbf16, #tpu.memory_space<vmem>>) attributes {dimension_semantics = [#tpu.dimension_semantics<parallel>], iteration_bounds = array<i64: 1>, scalar_prefetch = 0 : i64, scratch_operands = 0 : i64, tpu.core_type = #tpu.core_type<tc>, window_params = [{transform_indices = @transform_0, window_bounds = array<i64: 16, 128>}, {transform_indices = @transform_1, window_bounds = array<i64: 16, 128>}, {pipeline_mode = #tpu.pipeline_mode<synchronous>, transform_indices = @transform_2, window_bounds = array<i64: 32, 16>}, {pipeline_mode = #tpu.pipeline_mode<synchronous>, transform_indices = @transform_3, window_bounds = array<i64: 16, 16>}, {transform_indices = @transform_4, window_bounds = array<i64: 16, 128>}]} {
    %c0 = arith.constant 0 : index
    %c0_0 = arith.constant 0 : index
    %0 = vector.load %arg1[%c0, %c0_0] : memref<16x128xbf16, #tpu.memory_space<vmem>>, vector<16x128xbf16>
    %cst = arith.constant 0.000000e+00 : bf16
    %1 = vector.broadcast %cst : bf16 to vector<16x128xbf16>
    %2 = arith.maximumf %0, %1 : vector<16x128xbf16>
    %c0_1 = arith.constant 0 : index
    %c0_2 = arith.constant 0 : index
    %3 = vector.load %arg2[%c0_1, %c0_2] : memref<16x128xbf16, #tpu.memory_space<vmem>>, vector<16x128xbf16>
    %cst_3 = arith.constant 0.000000e+00 : bf16
    %4 = vector.broadcast %cst_3 : bf16 to vector<16x128xbf16>
    %5 = arith.maximumf %3, %4 : vector<16x128xbf16>
    %c0_4 = arith.constant 0 : index
    %c0_5 = arith.constant 0 : index
    %6 = vector.load %arg3[%c0_4, %c0_5] : memref<32x16xbf16, #tpu.memory_space<vmem>>, vector<16x16xbf16>
    %cst_6 = arith.constant dense<0.000000e+00> : vector<16x128xf32>
    %7 = tpu.matmul %6, %2, %cst_6 {dimension_numbers = #tpu.dot_dimension_numbers<[1], [0], [0], [1], [0, 0, 1, 1], [], []>} : vector<16x16xbf16>, vector<16x128xbf16>, vector<16x128xf32> -> vector<16x128xf32>
    %8 = vector.extract_strided_slice %2 {offsets = [0, 1], sizes = [16, 127], strides = [1, 1]} : vector<16x128xbf16> to vector<16x127xbf16>
    %9 = vector.extract_strided_slice %5 {offsets = [0, 0], sizes = [16, 1], strides = [1, 1]} : vector<16x128xbf16> to vector<16x1xbf16>
    %10 = tpu.concatenate %8, %9 in 1 : vector<16x127xbf16>, vector<16x1xbf16> -> vector<16x128xbf16>
    %c16 = arith.constant 16 : index
    %c0_7 = arith.constant 0 : index
    %11 = vector.load %arg3[%c16, %c0_7] : memref<32x16xbf16, #tpu.memory_space<vmem>>, vector<16x16xbf16>
    %cst_8 = arith.constant dense<0.000000e+00> : vector<16x128xf32>
    %12 = tpu.matmul %11, %10, %cst_8 {dimension_numbers = #tpu.dot_dimension_numbers<[1], [0], [0], [1], [0, 0, 1, 1], [], []>} : vector<16x16xbf16>, vector<16x128xbf16>, vector<16x128xf32> -> vector<16x128xf32>
    %13 = arith.addf %7, %12 : vector<16x128xf32>
    %cst_9 = arith.constant 0.000000e+00 : f32
    %14 = vector.broadcast %cst_9 : f32 to vector<16x128xf32>
    %15 = arith.maximumf %13, %14 : vector<16x128xf32>
    %c0_10 = arith.constant 0 : index
    %c0_11 = arith.constant 0 : index
    %16 = vector.load %arg4[%c0_10, %c0_11] : memref<16x16xbf16, #tpu.memory_space<vmem>>, vector<16x16xbf16>
    %17 = arith.truncf %15 : vector<16x128xf32> to vector<16x128xbf16>
    %cst_12 = arith.constant dense<0.000000e+00> : vector<16x128xf32>
    %18 = tpu.matmul %16, %17, %cst_12 {dimension_numbers = #tpu.dot_dimension_numbers<[1], [0], [0], [1], [0, 0, 1, 1], [], []>} : vector<16x16xbf16>, vector<16x128xbf16>, vector<16x128xf32> -> vector<16x128xf32>
    %19 = arith.truncf %18 : vector<16x128xf32> to vector<16x128xbf16>
    %c0_13 = arith.constant 0 : index
    %c0_14 = arith.constant 0 : index
    %20 = vector.load %arg5[%c0_13, %c0_14] : memref<16x128xbf16, #tpu.memory_space<vmem>>, vector<16x128xbf16>
    tpu.vector_store %arg5[%c0_13, %c0_14], %19 {strides = array<i32>} : memref<16x128xbf16, #tpu.memory_space<vmem>>, vector<16x128xbf16>,
    return
  }
  func.func @transform_0(%arg0: i32) -> (i32, i32) {
    %c0_i32 = arith.constant 0 : i32
    %c0_i32_0 = arith.constant 0 : i32
    return %c0_i32, %arg0 : i32, i32
  }
  func.func @transform_1(%arg0: i32) -> (i32, i32) {
    %c1_i32 = arith.constant 1 : i32
    %0 = arith.addi %arg0, %c1_i32 : i32
    %c1_i32_0 = arith.constant 1 : i32
    %1 = arith.muli %0, %c1_i32_0 : i32
    %c0_i32 = arith.constant 0 : i32
    %c0_i32_1 = arith.constant 0 : i32
    return %c0_i32, %1 : i32, i32
  }
  func.func @transform_2(%arg0: i32) -> (i32, i32) {
    %c0_i32 = arith.constant 0 : i32
    %c0_i32_0 = arith.constant 0 : i32
    %c0_i32_1 = arith.constant 0 : i32
    return %c0_i32, %c0_i32_0 : i32, i32
  }
  func.func @transform_3(%arg0: i32) -> (i32, i32) {
    %c0_i32 = arith.constant 0 : i32
    %c0_i32_0 = arith.constant 0 : i32
    %c0_i32_1 = arith.constant 0 : i32
    return %c0_i32, %c0_i32_0 : i32, i32
  }
  func.func @transform_4(%arg0: i32) -> (i32, i32) {
    %c0_i32 = arith.constant 0 : i32
    %c0_i32_0 = arith.constant 0 : i32
    return %c0_i32, %arg0 : i32, i32
  }
}

</mosaic_0001>

<bundles_post_ra>
// kernel: tpu_custom_call.1
= control target key start
LH: loop header
LB: loop body
LE: loop exit
PB: predicated region body
PF: predicated region fallthrough
CT: control target
= control target key end

     0   :  { %9 = vsyncpa [#allocation4], 0  ;;  %s491_s0 = inlined_call_operand.vmem [shape: bf16[16,256], index: 0, kind: input, shape index: {}]   ;;  %s492_s1 = inlined_call_operand.hbm [shape: bf16[16,256], index: 1, kind: input, shape index: {}]   ;;  %s493_s2 = inlined_call_operand.vmem [shape: bf16[32,16], index: 2, kind: input, shape index: {}]   ;;  %s494_s3 = inlined_call_operand.vmem [shape: bf16[16,16], index: 3, kind: input, shape index: {}]   ;;  %s495_s4 = inlined_call_operand.hbm [shape: bf16[16,128], index: 4, kind: output, shape index: {}]  }
   0x1   :  { %10 = vsyncpa [#allocation5], 0  ;;  %v28_v0 = vld [vmem:[%s491_s0] sm:$0xf]  ;;  %v30_v1 = vld [vmem:[%s491_s0 + $0x8] sm:$0xf] }
   0x2   :  { %29 = vst [vmem:[#allocation2] sm:$0xf] %v28_v0  ;;  %31 = vst [vmem:[#allocation2 + $0x4] sm:$0xf] %v30_v1  ;;  %s294_s21 = scalar_lea.hbm %s492_s1, 64  ;;  %s407_s22 = smov [#allocation3]  }
   0x3   :  { %s64_s23 = sshll.u32 %s407_s22, 4  ;;  %s380_s26 = scalar_lea.hbm %s492_s1, 192  ;;  %s65_s23 = int_to_ptr.vmem [resolvable:$true] %s64_s23 }
   0x4   :  { %p357_p0 = scmp.ne.s32.totalorder %s294_s21, %s380_s26  ;;  %s358_s29 = scalar_lea.hbm %s492_s1, 256 }
   0x5   :  { %p359_p1 = scmp.lt.u32.totalorder %s294_s21, %s492_s1  ;;  %p360_p2 = scmp.lt.u32.totalorder %s358_s29, %s380_s26 }
   0x6   :  { %p362_p4 = scmp.lt.u32.totalorder %s380_s26, %s294_s21 }
   0x7   :  { %p361_p3 = por %p360_p2, %p359_p1 }
   0x9   :  { %p363_p5 = por %p362_p4, %p361_p3 }
   0xb   :  { %p364_p6 = pnand %p363_p5, %p357_p0 }
   0xd   :  { %367 = shalt.err (!%p364_p6)
}
   0xe   :  { %s368_s5 = scalar_lea.vmem %s65_s23, 128  ;;  %p373_p8 = scmp.lt.s32.totalorder %s65_s23, %s65_s23 }
   0xf   :  { %p369_p7 = scmp.ne.s32.totalorder %s65_s23, %s368_s5  ;;  %p374_p9 = scmp.lt.s32.totalorder %s368_s5, %s368_s5 }
  0x11   :  { %p375_p10 = por %p374_p9, %p373_p8 }
  0x13   :  { %p376_p11 = pnand %p375_p10, %p369_p7 }
  0x15   :  { %379 = shalt.err (!%p376_p11)
}
  0x16   :  { %s408_s6 = smov 128   ;;  %s409_s7 = smov 64  }
  0x17   :  { %s410_s8 = smov 4  }
  0x18   :  { %70 = dma.hbm_to_vmem [thread:$0]  %s294_s21, 128, %s65_s23, [#allocation4], %s408_s6, %s409_s7, %s410_s8  }
  0x19   :  { %403 = dma.done.wait [#allocation4], 128  }
  0x1a   :  { %404 = vsyncadd [#allocation4], 4294967168  ;;  %v411_v2 = vmov 0.0   ;;  %vm412_vm0 = vmmov 0   ;;  %v82_v3 = vld [vmem:[#allocation2] sm:$0xf] }
  0x1b   :  { %322 = vmatprep.subr.bf16.mxu0 %v411_v2  ;;  %334 = vmatprep.subr.bf16.mxu1 %v411_v2  ;;  %v83_v4 = vld [vmem:[#allocation2 + $0x4] sm:$0xf]  ;;  %v86_v5 = vld [vmem:[#allocation3] sm:$0xf]  ;;  %v413_v6 = vmov 0   ;;  %s414_s1 = smov 127  }
  0x1c   :  { %324 = vmatprep.mubr.msk.bf16.mxu0 %vm412_vm0, %v411_v2  ;;  %336 = vmatprep.mubr.msk.bf16.mxu1 %vm412_vm0, %v411_v2  ;;  %v84_v7 = vmax.bf16 %v413_v6, %v82_v3  ;;  %v85_v8 = vmax.bf16 %v413_v6, %v83_v4  ;;  %v87_v9 = vld [vmem:[#allocation3 + $0x4] sm:$0xf]  ;;  %v88_v10 = vmax.bf16 %v413_v6, %v86_v5  ;;  %vm106_vm1 = vcmask 1039360   ;;  %v354_v18 = vld [vmem:[%s493_s2] sm:$0xff]   ;;  %s415_s15 = smov [#allocation6]  }
  0x1d   :  { %v89_v11 = vmax.bf16 %v413_v6, %v87_v9  ;;  %v353_v17 = vld [vmem:[%s493_s2 + $0x8] sm:$0xff]   ;;  %vm118_vm2 = vcmask 130048   ;;  %v355_v26 = vld [vmem:[%s494_s3] sm:$0xff]   ;;  %s282_s16 = sshll.u32 %s415_s15, 4  ;;  %s283_s16 = int_to_ptr.vmem [resolvable:$true] %s282_s16 }
  0x1e   :  { %v299_v12 = vcombine.low %v84_v7, %v85_v8  ;;  %s381_s2 = scalar_lea.vmem %s283_s16, 128  ;;  %p386_p13 = scmp.lt.s32.totalorder %s283_s16, %s283_s16 }
  0x1f   :  { %v300_v13 = vcombine.low %v88_v10, %v89_v11  ;;  %p382_p12 = scmp.ne.s32.totalorder %s283_s16, %s381_s2  ;;  %p387_p0 = scmp.lt.s32.totalorder %s381_s2, %s381_s2 }
  0x20   :  { %97 = vrot.lane.b32.xlu0 %v299_v12, %s414_s1 }
  0x21   :  { %p388_p1 = por %p387_p0, %p386_p13 }
  0x23   :  { %p389_p2 = pnand %p388_p1, %p382_p12 }
  0x24   :  { %104 = vrot.lane.b32.xlu0 %v300_v13, %s414_s1 }
  0x92   :  { %v98_v14 = vpop.permute.xlu0 %97 }
  0x96   :  { %v105_v15 = vpop.permute.xlu0 %104 }
  0x97   :  { %v109_v16 = vsel %vm106_vm1, %v98_v14, %v105_v15 }
  0x98   :  { %323 = vmatpush3.bf16.msra.mxu0 %v109_v16 }
  0x99   :  { %328 = vmatprep.subr.bf16.mxu0 %v411_v2 }
  0x9b   :  { %325 = vmatmul.mubr.msk.bf16.vlgmr.msra.gmra.mrb[0].mxu0 %vm118_vm2, %v353_v17 }
  0x9c   :  { %329 = vmatpush3.bf16.msra.mxu0 %v299_v12  ;;  %330 = vmatprep.mubr.msk.bf16.mxu0 %vm412_vm0, %v411_v2 }
  0xa7   :  { %331 = vmatmul.mubr.msk.bf16.vlgmr.msra.gmra.mrb[0].mxu0 %vm118_vm2, %v354_v18 }
 0x17a   :  { %v206_v19 = vpop.f32.mrb[0].mxu0 }
 0x17b   :  { %v332_v20 = vpop.f32.mrb[1].mxu0  ;;  %v213_v22 = vmax.f32 %v206_v19, 0.0 }
 0x17c   :  { %v209_v21 = vpop.f32.mrb[2].mxu0 }
 0x17d   :  { %v214_v23 = vmax.f32 %v209_v21, 0.0  ;;  %v333_v24 = vpop.f32.mrb[3].mxu0 }
 0x17f   :  { %v217_v25 = vpack.c.bf16 %v214_v23, %v213_v22 }
 0x181   :  { %335 = vmatpush3.bf16.msra.mxu1 %v217_v25 }
 0x184   :  { %337 = vmatmul.mubr.msk.bf16.vlgmr.msra.gmra.mrb[0].mxu1 %vm118_vm2, %v355_v26 }
 0x257   :  { %v260_v27 = vpop.f32.mrb[0].mxu1 }
 0x258   :  { %v338_v28 = vpop.f32.mrb[1].mxu1 }
 0x259   :  { %v263_v29 = vpop.f32.mrb[2].mxu1 }
 0x25a   :  { %v314_v30 = vpack.c.bf16 %v263_v29, %v260_v27  ;;  %v339_v31 = vpop.f32.mrb[3].mxu1 }
 0x25c   :  { %315 = vst [vmem:[#allocation6] sm:$0xff] %v314_v30  }
 0x25d   :  { %392 = shalt.err (!%p389_p2)
}
 0x25e   :  { %s393_s18 = scalar_lea.hbm %s495_s4, 128 }
 0x25f   :  { %p394_p3 = scmp.ne.s32.totalorder %s495_s4, %s393_s18  ;;  %p397_p4 = scmp.lt.u32.totalorder %s393_s18, %s495_s4 }
 0x261   :  { %p399_p5 = pnand %p397_p4, %p394_p3 }
 0x263   :  { %402 = shalt.err (!%p399_p5)
}
 0x264   :  { %288 = dma.vmem_to_hbm [thread:$0]  %s283_s16, 128, %s495_s4, [#allocation5], %s409_s7, %s409_s7, %s410_s8  }
 0x265   :  { %405 = dma.done.wait [#allocation5], 128  }
 0x266   :  { %406 = vsyncadd [#allocation5], 4294967168 }
 0x267   :  { %292 = vsyncpa [#allocation4], 1 }
 0x268   :  { %293 = vsyncpa [#allocation5], 1 }

</bundles_post_ra>
